<compile_context>
chip_gen: v6e
topology: v6e:2x2x1
jax: 0.10.0
libtpu: 0.0.40
codegen_flags: <defaults>
</compile_context>

<pallas_src>
import functools

import jax
import jax.numpy as jnp
from jax import lax
from jax.experimental import pallas as pl
from jax.experimental.pallas import tpu as pltpu

LANE = 128  # TPU lane width; each fused head segment is padded to this.


def _round_up(x, m):
    return ((x + m - 1) // m) * m


# ----------------------------------------------------------------------------
# Kernel
# ----------------------------------------------------------------------------
def dragonnet_kernel(
    x_ref,        # [TB, D_in]          streamed per grid step
    wb_ref,       # [D_in, F_pad]       backbone weight (VMEM-resident)
    bb_ref,       # [1, F_pad]          backbone bias
    wh_ref,       # [F_pad, 3*LANE]     fused level-1 head weight
    bh_ref,       # [1, 3*LANE]         fused level-1 head bias
    w2_ref,       # [3*LANE, LANE]      fused level-2 head weight (+ t pass-through)
    b2_ref,       # [1, LANE]           fused level-2 head bias
    out_ref,      # [TB, LANE]          cols 0/1/2 = sigmoid(t / y1 / y0 logits)
):
    seg = wh_ref.shape[1] // 3

    x = x_ref[...]

    # Backbone: Linear + ReLU  ->  z [TB, F_pad]
    z = jnp.dot(x, wb_ref[...], preferred_element_type=jnp.float32) + bb_ref[...]
    z = jnp.maximum(z, 0.0)

    # Fused level-1 heads: one wide matmul.
    #   cols [0, seg)        : t logit (col 0 useful)            -> NO ReLU
    #   cols [seg, 2*seg)    : y1 hidden layer (first H useful)  -> ReLU
    #   cols [2*seg, 3*seg)  : y0 hidden layer (first H useful)  -> ReLU
    h = jnp.dot(z, wh_ref[...], preferred_element_type=jnp.float32) + bh_ref[...]
    col = lax.broadcasted_iota(jnp.int32, h.shape, 1)
    a = jnp.where(col < seg, h, jnp.maximum(h, 0.0))

    # Fused level-2 heads + t pass-through: one matmul.
    #   out col 0 = t logit, col 1 = y1 logit, col 2 = y0 logit.
    logits = jnp.dot(a, w2_ref[...], preferred_element_type=jnp.float32) + b2_ref[...]

    # Single lane-dense (128-wide) store.
    out_ref[...] = jax.nn.sigmoid(logits)

    # TODO(synk): dropout is train-mode only in the PyTorch module; eval-mode
    # identity is reproduced here.


# ----------------------------------------------------------------------------
# One-time weight fusion / padding (plain JAX, outside the kernel)
# ----------------------------------------------------------------------------
def build_fused_params(p):
    wb, bb = p["wb"], p["bb"]
    d_in, f = wb.shape
    h = p["w1y1"].shape[1]
    f_pad = _round_up(f, LANE)
    seg = _round_up(max(h, 1), LANE)

    wb_p = jnp.zeros((d_in, f_pad), jnp.float32).at[:, :f].set(wb)
    bb_p = jnp.zeros((1, f_pad), jnp.float32).at[:, :f].set(bb)

    wh = jnp.zeros((f_pad, 3 * seg), jnp.float32)
    wh = wh.at[:f, 0:1].set(p["wt"])
    wh = wh.at[:f, seg:seg + h].set(p["w1y1"])
    wh = wh.at[:f, 2 * seg:2 * seg + h].set(p["w1y0"])

    bh = jnp.zeros((1, 3 * seg), jnp.float32)
    bh = bh.at[:, 0:1].set(p["bt"])
    bh = bh.at[:, seg:seg + h].set(p["b1y1"])
    bh = bh.at[:, 2 * seg:2 * seg + h].set(p["b1y0"])

    w2 = jnp.zeros((3 * seg, LANE), jnp.float32)
    w2 = w2.at[0, 0].set(1.0)                             # pass t logit to col 0
    w2 = w2.at[seg:seg + h, 1:2].set(p["w2y1"])           # y1 logit -> col 1
    w2 = w2.at[2 * seg:2 * seg + h, 2:3].set(p["w2y0"])   # y0 logit -> col 2

    b2 = jnp.zeros((1, LANE), jnp.float32)
    b2 = b2.at[0, 1].set(p["b2y1"][0, 0])
    b2 = b2.at[0, 2].set(p["b2y0"][0, 0])

    return wb_p, bb_p, wh, bh, w2, b2


# ----------------------------------------------------------------------------
# Wrapper
# ----------------------------------------------------------------------------
@functools.partial(jax.jit, static_argnames=("tb",))
def _dragonnet_call(x, wb, bb, wh, bh, w2, b2, *, tb):
    b_pad, d_in = x.shape
    f_pad = wb.shape[1]
    w3 = wh.shape[1]
    grid = (b_pad // tb,)

    out = pl.pallas_call(
        dragonnet_kernel,
        out_shape=jax.ShapeDtypeStruct((b_pad, LANE), jnp.float32),
        grid_spec=pltpu.PrefetchScalarGridSpec(
            num_scalar_prefetch=0,
            grid=grid,
            in_specs=[
                pl.BlockSpec((tb, d_in), lambda i: (i, 0)),      # x: streamed
                pl.BlockSpec((d_in, f_pad), lambda i: (0, 0)),   # weights: resident
                pl.BlockSpec((1, f_pad), lambda i: (0, 0)),
                pl.BlockSpec((f_pad, w3), lambda i: (0, 0)),
                pl.BlockSpec((1, w3), lambda i: (0, 0)),
                pl.BlockSpec((w3, LANE), lambda i: (0, 0)),
                pl.BlockSpec((1, LANE), lambda i: (0, 0)),
            ],
            out_specs=pl.BlockSpec((tb, LANE), lambda i: (i, 0)),
        ),
        compiler_params=pltpu.CompilerParams(
            dimension_semantics=("parallel",),   # megacore sharding on v7x
        ),
    )(x, wb, bb, wh, bh, w2, b2)
    return out


def dragonnet_forward(x, params, *, tb=None):
    """Returns {'t','y1','y0'} each of shape [B], matching the PyTorch module."""
    b, _ = x.shape
    if tb is None:
        # Largest-tile-that-fits heuristic; 512 keeps well under v7x's 32 MiB
        # default scoped VMEM even with large D_in (double-buffered x tile +
        # resident fused weights), while amortizing per-step overhead.  Small
        # batches use one 8-aligned tile.
        tb = min(512, _round_up(b, 8))
    b_pad = _round_up(b, tb)
    x_p = x.astype(jnp.float32)
    if b_pad != b:
        x_p = jnp.pad(x_p, ((0, b_pad - b), (0, 0)))

    fused = build_fused_params(params)
    out = _dragonnet_call(x_p, *fused, tb=tb)
    return {"t": out[:b, 0], "y1": out[:b, 1], "y0": out[:b, 2]}


# ----------------------------------------------------------------------------
# Parameter init + pure-JAX reference (for the correctness check)
# ----------------------------------------------------------------------------
def init_params(key, d_in, feature_dim):
    hidden = feature_dim // 2  # MLP(feature_dim, 1, 2, shrink=2)
    ks = jax.random.split(key, 12)

    def lin(kw, kb, fan_in, fan_out):
        bound = 1.0 / jnp.sqrt(fan_in)
        w = jax.random.uniform(kw, (fan_in, fan_out), jnp.float32, -bound, bound)
        b = jax.random.uniform(kb, (1, fan_out), jnp.float32, -bound, bound)
        return w, b

    wb, bb = lin(ks[0], ks[1], d_in, feature_dim)
    wt, bt = lin(ks[2], ks[3], feature_dim, 1)
    w1y1, b1y1 = lin(ks[4], ks[5], feature_dim, hidden)
    w2y1, b2y1 = lin(ks[6], ks[7], hidden, 1)
    w1y0, b1y0 = lin(ks[8], ks[9], feature_dim, hidden)
    w2y0, b2y0 = lin(ks[10], ks[11], hidden, 1)
    return dict(wb=wb, bb=bb, wt=wt, bt=bt,
                w1y1=w1y1, b1y1=b1y1, w2y1=w2y1, b2y1=b2y1,
                w1y0=w1y0, b1y0=b1y0, w2y0=w2y0, b2y0=b2y0)


def reference_forward(x, p):
    z = jnp.maximum(x @ p["wb"] + p["bb"], 0.0)
    t = jax.nn.sigmoid(z @ p["wt"] + p["bt"])[:, 0]
    h1 = jnp.maximum(z @ p["w1y1"] + p["b1y1"], 0.0)
    y1 = jax.nn.sigmoid(h1 @ p["w2y1"] + p["b2y1"])[:, 0]
    h0 = jnp.maximum(z @ p["w1y0"] + p["b1y0"], 0.0)
    y0 = jax.nn.sigmoid(h0 @ p["w2y0"] + p["b2y0"])[:, 0]
    return {"t": t, "y1": y1, "y0": y0}


if __name__ == "__main__":
    D_IN, FEATURE_DIM = 16, 32

    key = jax.random.PRNGKey(0)
    kx, kp, kx2 = jax.random.split(key, 3)
    params = init_params(kp, D_IN, FEATURE_DIM)

    # Small single-tile case.
    B = 8
    x = jax.random.normal(kx, (B, D_IN), dtype=jnp.float32)
    out = dragonnet_forward(x, params)
    jax.block_until_ready(out)
    ref = reference_forward(x, params)
    for k in ("t", "y1", "y0"):
        assert out[k].shape == (B,)
        assert jnp.allclose(out[k], ref[k], atol=1e-5, rtol=1e-5), k

    # Multi-tile case with batch padding (exercises grid > 1 + parallel axis).
    B2 = 20
    x2 = jax.random.normal(kx2, (B2, D_IN), dtype=jnp.float32)
    out2 = dragonnet_forward(x2, params, tb=8)   # b_pad=24, grid=(3,)
    jax.block_until_ready(out2)
    ref2 = reference_forward(x2, params)
    for k in ("t", "y1", "y0"):
        assert out2[k].shape == (B2,)
        assert jnp.allclose(out2[k], ref2[k], atol=1e-5, rtol=1e-5), k

    print("KERNEL_OK")
</pallas_src>

<mosaic_0001>
module attributes {stable_mosaic.version = 11 : i64} {
  func.func @dragonnet_kernel(%arg0: i32, %arg1: memref<8x16xf32, #tpu.memory_space<vmem>>, %arg2: memref<16x128xf32, #tpu.memory_space<vmem>>, %arg3: memref<1x128xf32, #tpu.memory_space<vmem>>, %arg4: memref<128x384xf32, #tpu.memory_space<vmem>>, %arg5: memref<1x384xf32, #tpu.memory_space<vmem>>, %arg6: memref<384x128xf32, #tpu.memory_space<vmem>>, %arg7: memref<1x128xf32, #tpu.memory_space<vmem>>, %arg8: memref<8x128xf32, #tpu.memory_space<vmem>>) attributes {dimension_semantics = [#tpu.dimension_semantics<parallel>], iteration_bounds = array<i64: 1>, scalar_prefetch = 0 : i64, scratch_operands = 0 : i64, tpu.core_type = #tpu.core_type<tc>, window_params = [{transform_indices = @transform_0, window_bounds = array<i64: 8, 16>}, {pipeline_mode = #tpu.pipeline_mode<synchronous>, transform_indices = @transform_1, window_bounds = array<i64: 16, 128>}, {pipeline_mode = #tpu.pipeline_mode<synchronous>, transform_indices = @transform_2, window_bounds = array<i64: 1, 128>}, {pipeline_mode = #tpu.pipeline_mode<synchronous>, transform_indices = @transform_3, window_bounds = array<i64: 128, 384>}, {pipeline_mode = #tpu.pipeline_mode<synchronous>, transform_indices = @transform_4, window_bounds = array<i64: 1, 384>}, {pipeline_mode = #tpu.pipeline_mode<synchronous>, transform_indices = @transform_5, window_bounds = array<i64: 384, 128>}, {pipeline_mode = #tpu.pipeline_mode<synchronous>, transform_indices = @transform_6, window_bounds = array<i64: 1, 128>}, {transform_indices = @transform_7, window_bounds = array<i64: 8, 128>}]} {
    %c0 = arith.constant 0 : index
    %c0_0 = arith.constant 0 : index
    %0 = vector.load %arg1[%c0, %c0_0] : memref<8x16xf32, #tpu.memory_space<vmem>>, vector<8x16xf32>
    %c0_1 = arith.constant 0 : index
    %c0_2 = arith.constant 0 : index
    %1 = vector.load %arg2[%c0_1, %c0_2] : memref<16x128xf32, #tpu.memory_space<vmem>>, vector<16x128xf32>
    %cst = arith.constant dense<0.000000e+00> : vector<8x128xf32>
    %2 = tpu.matmul %0, %1, %cst {dimension_numbers = #tpu.dot_dimension_numbers<[1], [0], [0], [1], [0, 0, 1, 1], [], []>} : vector<8x16xf32>, vector<16x128xf32>, vector<8x128xf32> -> vector<8x128xf32>
    %c0_3 = arith.constant 0 : index
    %c0_4 = arith.constant 0 : index
    %3 = vector.load %arg3[%c0_3, %c0_4] : memref<1x128xf32, #tpu.memory_space<vmem>>, vector<1x128xf32>
    %4 = vector.broadcast %3 : vector<1x128xf32> to vector<8x128xf32>
    %5 = arith.addf %2, %4 : vector<8x128xf32>
    %cst_5 = arith.constant 0.000000e+00 : f32
    %6 = vector.broadcast %cst_5 : f32 to vector<8x128xf32>
    %7 = arith.maximumf %5, %6 : vector<8x128xf32>
    %c0_6 = arith.constant 0 : index
    %c0_7 = arith.constant 0 : index
    %8 = vector.load %arg4[%c0_6, %c0_7] : memref<128x384xf32, #tpu.memory_space<vmem>>, vector<128x384xf32>
    %cst_8 = arith.constant dense<0.000000e+00> : vector<8x384xf32>
    %9 = tpu.matmul %7, %8, %cst_8 {dimension_numbers = #tpu.dot_dimension_numbers<[1], [0], [0], [1], [0, 0, 1, 1], [], []>} : vector<8x128xf32>, vector<128x384xf32>, vector<8x384xf32> -> vector<8x384xf32>
    %c0_9 = arith.constant 0 : index
    %c0_10 = arith.constant 0 : index
    %10 = vector.load %arg5[%c0_9, %c0_10] : memref<1x384xf32, #tpu.memory_space<vmem>>, vector<1x384xf32>
    %11 = vector.broadcast %10 : vector<1x384xf32> to vector<8x384xf32>
    %12 = arith.addf %9, %11 : vector<8x384xf32>
    %13 = tpu.iota {dimensions = array<i32: 1>} : vector<8x384xi32>
    %c128_i32 = arith.constant 128 : i32
    %14 = vector.broadcast %c128_i32 : i32 to vector<8x384xi32>
    %15 = arith.cmpi slt, %13, %14 : vector<8x384xi32>
    %cst_11 = arith.constant 0.000000e+00 : f32
    %16 = vector.broadcast %cst_11 : f32 to vector<8x384xf32>
    %17 = arith.maximumf %12, %16 : vector<8x384xf32>
    %18 = arith.select %15, %12, %17 : vector<8x384xi1>, vector<8x384xf32>
    %c0_12 = arith.constant 0 : index
    %c0_13 = arith.constant 0 : index
    %19 = vector.load %arg6[%c0_12, %c0_13] : memref<384x128xf32, #tpu.memory_space<vmem>>, vector<384x128xf32>
    %cst_14 = arith.constant dense<0.000000e+00> : vector<8x128xf32>
    %20 = tpu.matmul %18, %19, %cst_14 {dimension_numbers = #tpu.dot_dimension_numbers<[1], [0], [0], [1], [0, 0, 1, 1], [], []>} : vector<8x384xf32>, vector<384x128xf32>, vector<8x128xf32> -> vector<8x128xf32>
    %c0_15 = arith.constant 0 : index
    %c0_16 = arith.constant 0 : index
    %21 = vector.load %arg7[%c0_15, %c0_16] : memref<1x128xf32, #tpu.memory_space<vmem>>, vector<1x128xf32>
    %22 = vector.broadcast %21 : vector<1x128xf32> to vector<8x128xf32>
    %23 = arith.addf %20, %22 : vector<8x128xf32>
    %24 = arith.negf %23 : vector<8x128xf32>
    %25 = math.exp %24 : vector<8x128xf32>
    %cst_17 = arith.constant 1.000000e+00 : f32
    %26 = vector.broadcast %cst_17 : f32 to vector<8x128xf32>
    %27 = arith.addf %26, %25 : vector<8x128xf32>
    %28 = arith.divf %26, %27 : vector<8x128xf32>
    %c0_18 = arith.constant 0 : index
    %c0_19 = arith.constant 0 : index
    %29 = vector.load %arg8[%c0_18, %c0_19] : memref<8x128xf32, #tpu.memory_space<vmem>>, vector<8x128xf32>
    tpu.vector_store %arg8[%c0_18, %c0_19], %28 {strides = array<i32>} : memref<8x128xf32, #tpu.memory_space<vmem>>, vector<8x128xf32>,
    return
  }
  func.func @transform_0(%arg0: i32) -> (i32, i32) {
    %c0_i32 = arith.constant 0 : i32
    %c0_i32_0 = arith.constant 0 : i32
    return %arg0, %c0_i32 : i32, i32
  }
  func.func @transform_1(%arg0: i32) -> (i32, i32) {
    %c0_i32 = arith.constant 0 : i32
    %c0_i32_0 = arith.constant 0 : i32
    %c0_i32_1 = arith.constant 0 : i32
    return %c0_i32, %c0_i32_0 : i32, i32
  }
  func.func @transform_2(%arg0: i32) -> (i32, i32) {
    %c0_i32 = arith.constant 0 : i32
    %c0_i32_0 = arith.constant 0 : i32
    %c0_i32_1 = arith.constant 0 : i32
    return %c0_i32, %c0_i32_0 : i32, i32
  }
  func.func @transform_3(%arg0: i32) -> (i32, i32) {
    %c0_i32 = arith.constant 0 : i32
    %c0_i32_0 = arith.constant 0 : i32
    %c0_i32_1 = arith.constant 0 : i32
    return %c0_i32, %c0_i32_0 : i32, i32
  }
  func.func @transform_4(%arg0: i32) -> (i32, i32) {
    %c0_i32 = arith.constant 0 : i32
    %c0_i32_0 = arith.constant 0 : i32
    %c0_i32_1 = arith.constant 0 : i32
    return %c0_i32, %c0_i32_0 : i32, i32
  }
  func.func @transform_5(%arg0: i32) -> (i32, i32) {
    %c0_i32 = arith.constant 0 : i32
    %c0_i32_0 = arith.constant 0 : i32
    %c0_i32_1 = arith.constant 0 : i32
    return %c0_i32, %c0_i32_0 : i32, i32
  }
  func.func @transform_6(%arg0: i32) -> (i32, i32) {
    %c0_i32 = arith.constant 0 : i32
    %c0_i32_0 = arith.constant 0 : i32
    %c0_i32_1 = arith.constant 0 : i32
    return %c0_i32, %c0_i32_0 : i32, i32
  }
  func.func @transform_7(%arg0: i32) -> (i32, i32) {
    %c0_i32 = arith.constant 0 : i32
    %c0_i32_0 = arith.constant 0 : i32
    return %arg0, %c0_i32 : i32, i32
  }
}

</mosaic_0001>

<bundles_post_ra>
// kernel: _dragonnet_call.1
= control target key start
LH: loop header
LB: loop body
LE: loop exit
PB: predicated region body
PF: predicated region fallthrough
CT: control target
= control target key end

     0   :  { %12 = vsyncpa [#allocation3], 0  ;;  %s1001_s0 = inlined_call_operand.hbm [shape: f32[8,16], index: 0, kind: input, shape index: {}]   ;;  %s1002_s1 = inlined_call_operand.hbm [shape: f32[16,128], index: 1, kind: input, shape index: {}]   ;;  %s1003_s2 = inlined_call_operand.vmem [shape: f32[1,128], index: 2, kind: input, shape index: {}]   ;;  %s1004_s3 = inlined_call_operand.hbm [shape: f32[128,384], index: 3, kind: input, shape index: {}]   ;;  %s1005_s4 = inlined_call_operand.vmem [shape: f32[1,384], index: 4, kind: input, shape index: {}]   ;;  %s1006_s5 = inlined_call_operand.hbm [shape: f32[384,128], index: 5, kind: input, shape index: {}]   ;;  %s1007_s6 = inlined_call_operand.vmem [shape: f32[1,128], index: 6, kind: input, shape index: {}]   ;;  %s1008_s7 = inlined_call_operand.hbm [shape: f32[8,128], index: 7, kind: output, shape index: {}]  }
   0x1   :  { %13 = vsyncpa [#allocation6], 0 }
   0x2   :  { %14 = vsyncpa [#allocation9], 0 }
   0x3   :  { %15 = vsyncpa [#allocation4], 0  ;;  %s879_s24 = smov [#allocation5]  }
   0x4   :  { %s31_s25 = sshll.u32 %s879_s24, 4  ;;  %s32_s25 = int_to_ptr.vmem [resolvable:$true] %s31_s25 }
   0x5   :  { %s779_s26 = scalar_lea.vmem %s32_s25, 256  ;;  %p784_p1 = scmp.lt.s32.totalorder %s32_s25, %s32_s25 }
   0x6   :  { %p780_p0 = scmp.ne.s32.totalorder %s32_s25, %s779_s26  ;;  %p785_p2 = scmp.lt.s32.totalorder %s779_s26, %s779_s26 }
   0x8   :  { %p786_p3 = por %p785_p2, %p784_p1 }
   0xa   :  { %p787_p4 = pnand %p786_p3, %p780_p0 }
   0xc   :  { %790 = shalt.err (!%p787_p4)
}
   0xd   :  { %s880_s27 = smov 128   ;;  %s881_s28 = smov 8  }
   0xe   :  { %37 = dma.hbm_to_vmem [thread:$0]  %s1002_s1, 256, %s32_s25, [#allocation6], %s880_s27, %s880_s27, %s881_s28  }
   0xf   :  { %s882_s8 = smov [#allocation2]   ;;  %s883_s10 = smov [#allocation7]  }
  0x10   :  { %s22_s9 = sshll.u32 %s882_s8, 4  ;;  %s45_s11 = sshll.u32 %s883_s10, 4  ;;  %s23_s9 = int_to_ptr.vmem [resolvable:$true] %s22_s9  ;;  %s46_s11 = int_to_ptr.vmem [resolvable:$true] %s45_s11 }
  0x11   :  { %s799_s12 = scalar_lea.vmem %s23_s9, 128  ;;  %p804_p6 = scmp.lt.s32.totalorder %s23_s9, %s23_s9 }
  0x12   :  { %p800_p5 = scmp.ne.s32.totalorder %s23_s9, %s799_s12  ;;  %p805_p7 = scmp.lt.s32.totalorder %s799_s12, %s799_s12 }
  0x14   :  { %p806_p8 = por %p805_p7, %p804_p6 }
  0x16   :  { %p807_p9 = pnand %p806_p8, %p800_p5 }
  0x18   :  { %810 = shalt.err (!%p807_p9)
}
  0x19   :  { %25 = dma.hbm_to_vmem [thread:$0]  %s1001_s0, 128, %s23_s9, [#allocation3]  }
  0x1a   :  { %s819_s15 = scalar_lea.vmem %s46_s11, 6144  ;;  %p824_p11 = scmp.lt.s32.totalorder %s46_s11, %s46_s11 }
  0x1b   :  { %p820_p10 = scmp.ne.s32.totalorder %s46_s11, %s819_s15  ;;  %p825_p12 = scmp.lt.s32.totalorder %s819_s15, %s819_s15 }
  0x1d   :  { %p826_p13 = por %p825_p12, %p824_p11 }
  0x1f   :  { %p827_p0 = pnand %p826_p13, %p820_p10 }
  0x21   :  { %830 = shalt.err (!%p827_p0)
}
  0x22   :  { %s884_s1 = smov 384   ;;  %s885_s16 = smov 24  }
  0x23   :  { %51 = dma.hbm_to_vmem [thread:$0]  %s1004_s3, 6144, %s46_s11, [#allocation6], %s884_s1, %s884_s1, %s885_s16  }
  0x24   :  { %s886_s19 = smov [#allocation8]  }
  0x25   :  { %s59_s20 = sshll.u32 %s886_s19, 4  ;;  %s60_s20 = int_to_ptr.vmem [resolvable:$true] %s59_s20 }
  0x26   :  { %s839_s21 = scalar_lea.vmem %s60_s20, 6144  ;;  %p844_p2 = scmp.lt.s32.totalorder %s60_s20, %s60_s20 }
  0x27   :  { %p840_p1 = scmp.ne.s32.totalorder %s60_s20, %s839_s21  ;;  %p845_p3 = scmp.lt.s32.totalorder %s839_s21, %s839_s21 }
  0x29   :  { %p846_p4 = por %p845_p3, %p844_p2 }
  0x2b   :  { %p847_p5 = pnand %p846_p4, %p840_p1 }
  0x2d   :  { %850 = shalt.err (!%p847_p5)
}
  0x2e   :  { %65 = dma.hbm_to_vmem [thread:$0]  %s1006_s5, 6144, %s60_s20, [#allocation9], %s880_s27, %s880_s27, %s881_s28  }
  0x2f   :  { %871 = dma.done.wait [#allocation3], 128  }
  0x30   :  { %872 = vsyncadd [#allocation3], 4294967168 }
  0x31   :  { %873 = dma.done.wait [#allocation6], 6400  }
  0x32   :  { %874 = vsyncadd [#allocation6], 4294960896 }
  0x33   :  { %875 = dma.done.wait [#allocation9], 6144  }
  0x34   :  { %876 = vsyncadd [#allocation9], 4294961152  ;;  %v887_v0 = vmov 0.0   ;;  %vm888_vm0 = vmmov 0   ;;  %v82_v1 = vld [vmem:[#allocation5 + $0x8] sm:$0xff]  ;;  %v81_v2 = vld [vmem:[#allocation5] sm:$0xff] }
  0x35   :  { %679 = vmatprep.subr.mxu0 %v887_v0  ;;  %683 = vmatprep.mubr.msk.f32.mxu0 %vm888_vm0, %v887_v0  ;;  %v80_v3 = vld [vmem:[#allocation2] sm:$0xff]  ;;  %vm90_vm1 = vcmask 130048   ;;  %v211_v4 = vld [vmem:[#allocation7 + $0x170] sm:$0xff]  ;;  %v212_v6 = vld [vmem:[#allocation7 + $0x178] sm:$0xff]  ;;  %s889_s25 = smov [#allocation10]  }
  0x36   :  { %294 = vmatprep.mubr.f32.mxu1 %v887_v0  ;;  %680 = vmatpush3.msra.mxu0 %v82_v1  ;;  %v210_v5 = vld [vmem:[#allocation7 + $0x168] sm:$0xff]  ;;  %v208_v7 = vld [vmem:[#allocation7 + $0x158] sm:$0xff]  ;;  %v207_v8 = vld [vmem:[#allocation7 + $0x150] sm:$0xff]  ;;  %s592_s26 = sshll.u32 %s889_s25, 4  ;;  %s593_s26 = int_to_ptr.vmem [resolvable:$true] %s592_s26 }
  0x37   :  { %681 = vmatprep.subr.mxu0 %v887_v0  ;;  %230 = vmatprep.subr.mxu1 %v211_v4  ;;  %v209_v9 = vld [vmem:[#allocation7 + $0x160] sm:$0xff]  ;;  %v204_v11 = vld [vmem:[#allocation7 + $0x138] sm:$0xff]  ;;  %v206_v12 = vld [vmem:[#allocation7 + $0x148] sm:$0xff]  ;;  %s851_s27 = scalar_lea.vmem %s593_s26, 128  ;;  %p856_p7 = scmp.lt.s32.totalorder %s593_s26, %s593_s26 }
  0x38   :  { %682 = vmatpush3.msra.mxu0 %v81_v2  ;;  %231 = vmatpush1.msra.mxu1 %v210_v5  ;;  %v205_v10 = vld [vmem:[#allocation7 + $0x140] sm:$0xff]  ;;  %v202_v13 = vld [vmem:[#allocation7 + $0x128] sm:$0xff]  ;;  %v203_v15 = vld [vmem:[#allocation7 + $0x130] sm:$0xff]  ;;  %p852_p6 = scmp.ne.s32.totalorder %s593_s26, %s851_s27  ;;  %p857_p8 = scmp.lt.s32.totalorder %s851_s27, %s851_s27 }
  0x39   :  { %684 = vmatmul.mubr.msk.f32.vlgmr.msra.gmra.mxu0 %vm90_vm1, %v80_v3  ;;  %686 = vmatprep.subr.mxu0 %v887_v0  ;;  %v201_v14 = vld [vmem:[#allocation7 + $0x120] sm:$0xff]  ;;  %v199_v16 = vld [vmem:[#allocation7 + $0x110] sm:$0xff]  ;;  %v198_v17 = vld [vmem:[#allocation7 + $0x108] sm:$0xff] }
  0x3a   :  { %687 = vmatpush3.msra.mxu0 %v212_v6  ;;  %232 = vmatprep.subr.mxu1 %v208_v7  ;;  %v200_v18 = vld [vmem:[#allocation7 + $0x118] sm:$0xff]  ;;  %v195_v20 = vld [vmem:[#allocation7 + $0xf0] sm:$0xff]  ;;  %v197_v21 = vld [vmem:[#allocation7 + $0x100] sm:$0xff]  ;;  %p858_p9 = por %p857_p8, %p856_p7 }
  0x3b   :  { %688 = vmatprep.subr.mxu0 %v887_v0  ;;  %233 = vmatpush1.msra.mxu1 %v207_v8  ;;  %v196_v19 = vld [vmem:[#allocation7 + $0xf8] sm:$0xff]  ;;  %v193_v22 = vld [vmem:[#allocation7 + $0xe0] sm:$0xff]  ;;  %v194_v24 = vld [vmem:[#allocation7 + $0xe8] sm:$0xff] }
  0x3c   :  { %689 = vmatpush3.msra.mxu0 %v209_v9  ;;  %234 = vmatprep.subr.mxu1 %v205_v10  ;;  %v192_v23 = vld [vmem:[#allocation7 + $0xd8] sm:$0xff]  ;;  %v190_v25 = vld [vmem:[#allocation7 + $0xc8] sm:$0xff]  ;;  %v189_v26 = vld [vmem:[#allocation7 + $0xc0] sm:$0xff]  ;;  %p859_p10 = pnand %p858_p9, %p852_p6 }
  0x3d   :  { %690 = vmatprep.subr.mxu0 %v887_v0  ;;  %235 = vmatpush1.msra.mxu1 %v204_v11  ;;  %v191_v27 = vld [vmem:[#allocation7 + $0xd0] sm:$0xff]  ;;  %v186_v29 = vld [vmem:[#allocation7 + $0xa8] sm:$0xff]  ;;  %v188_v30 = vld [vmem:[#allocation7 + $0xb8] sm:$0xff] }
  0x3e   :  { %691 = vmatpush3.msra.mxu0 %v206_v12  ;;  %236 = vmatprep.subr.mxu1 %v202_v13  ;;  %v187_v28 = vld [vmem:[#allocation7 + $0xb0] sm:$0xff]  ;;  %v184_v31 = vld [vmem:[#allocation7 + $0x98] sm:$0xff]  ;;  %v185_v33 = vld [vmem:[#allocation7 + $0xa0] sm:$0xff] }
  0x3f   :  { %692 = vmatprep.subr.mxu0 %v887_v0  ;;  %237 = vmatpush1.msra.mxu1 %v201_v14  ;;  %v183_v32 = vld [vmem:[#allocation7 + $0x90] sm:$0xff]  ;;  %v181_v34 = vld [vmem:[#allocation7 + $0x80] sm:$0xff]  ;;  %v180_v35 = vld [vmem:[#allocation7 + $0x78] sm:$0xff] }
  0x40   :  { %693 = vmatpush3.msra.mxu0 %v203_v15  ;;  %238 = vmatprep.subr.mxu1 %v199_v16  ;;  %v182_v36 = vld [vmem:[#allocation7 + $0x88] sm:$0xff]  ;;  %v177_v38 = vld [vmem:[#allocation7 + $0x60] sm:$0xff]  ;;  %v179_v39 = vld [vmem:[#allocation7 + $0x70] sm:$0xff] }
  0x41   :  { %694 = vmatprep.subr.mxu0 %v887_v0  ;;  %239 = vmatpush1.msra.mxu1 %v198_v17  ;;  %v178_v37 = vld [vmem:[#allocation7 + $0x68] sm:$0xff]  ;;  %v175_v40 = vld [vmem:[#allocation7 + $0x50] sm:$0xff]  ;;  %v176_v42 = vld [vmem:[#allocation7 + $0x58] sm:$0xff] }
  0x42   :  { %695 = vmatpush3.msra.mxu0 %v200_v18  ;;  %240 = vmatprep.subr.mxu1 %v196_v19  ;;  %v174_v41 = vld [vmem:[#allocation7 + $0x48] sm:$0xff]  ;;  %v172_v43 = vld [vmem:[#allocation7 + $0x38] sm:$0xff]  ;;  %v171_v44 = vld [vmem:[#allocation7 + $0x30] sm:$0xff] }
  0x43   :  { %696 = vmatprep.subr.mxu0 %v887_v0  ;;  %241 = vmatpush1.msra.mxu1 %v195_v20  ;;  %v173_v45 = vld [vmem:[#allocation7 + $0x40] sm:$0xff]  ;;  %v168_v47 = vld [vmem:[#allocation7 + $0x18] sm:$0xff]  ;;  %v170_v48 = vld [vmem:[#allocation7 + $0x28] sm:$0xff] }
  0x44   :  { %697 = vmatpush3.msra.mxu0 %v197_v21  ;;  %242 = vmatprep.subr.mxu1 %v193_v22  ;;  %v169_v46 = vld [vmem:[#allocation7 + $0x20] sm:$0xff]  ;;  %v166_v49 = vld [vmem:[#allocation7 + $0x8] sm:$0xff]  ;;  %v167_v51 = vld [vmem:[#allocation7 + $0x10] sm:$0xff] }
  0x45   :  { %698 = vmatprep.subr.mxu0 %v887_v0  ;;  %243 = vmatpush1.msra.mxu1 %v192_v23  ;;  %v165_v50 = vld [vmem:[#allocation7] sm:$0xff]  ;;  %v415_v52 = vld [vmem:[#allocation8 + $0xf8] sm:$0xff]  ;;  %v603_v53 = vld [vmem:[%s1003_s2] ss:$0 sm:$0xff] }
  0x46   :  { %699 = vmatpush3.msra.mxu0 %v194_v24  ;;  %244 = vmatprep.subr.mxu1 %v190_v25  ;;  %v431_v58 = vld [vmem:[#allocation8 + $0x178] sm:$0xff]  ;;  %v414_v60 = vld [vmem:[#allocation8 + $0xf0] sm:$0xff]  ;;  %v413_v63 = vld [vmem:[#allocation8 + $0xe8] sm:$0xff] }
  0x47   :  { %700 = vmatprep.subr.mxu0 %v887_v0  ;;  %245 = vmatpush1.msra.mxu1 %v189_v26  ;;  %v399_v59 = vld [vmem:[#allocation8 + $0x78] sm:$0xff]  ;;  %v430_v61 = vld [vmem:[#allocation8 + $0x170] sm:$0xff]  ;;  %v429_v1 = vld [vmem:[#allocation8 + $0x168] sm:$0xff] }
  0x48   :  { %701 = vmatpush3.msra.mxu0 %v191_v27  ;;  %246 = vmatprep.subr.mxu1 %v187_v28  ;;  %v398_v62 = vld [vmem:[#allocation8 + $0x70] sm:$0xff]  ;;  %v397_v2 = vld [vmem:[#allocation8 + $0x68] sm:$0xff]  ;;  %v412_v3 = vld [vmem:[#allocation8 + $0xe0] sm:$0xff] }
  0x49   :  { %702 = vmatprep.subr.mxu0 %v887_v0  ;;  %247 = vmatpush1.msra.mxu1 %v186_v29  ;;  %v428_v4 = vld [vmem:[#allocation8 + $0x160] sm:$0xff]  ;;  %v411_v6 = vld [vmem:[#allocation8 + $0xd8] sm:$0xff]  ;;  %v410_v9 = vld [vmem:[#allocation8 + $0xd0] sm:$0xff] }
  0x4a   :  { %703 = vmatpush3.msra.mxu0 %v188_v30  ;;  %248 = vmatprep.subr.mxu1 %v184_v31  ;;  %v396_v5 = vld [vmem:[#allocation8 + $0x60] sm:$0xff]  ;;  %v427_v7 = vld [vmem:[#allocation8 + $0x158] sm:$0xff]  ;;  %v426_v10 = vld [vmem:[#allocation8 + $0x150] sm:$0xff] }
  0x4b   :  { %704 = vmatprep.subr.mxu0 %v887_v0  ;;  %249 = vmatpush1.msra.mxu1 %v183_v32  ;;  %v395_v8 = vld [vmem:[#allocation8 + $0x58] sm:$0xff]  ;;  %v394_v11 = vld [vmem:[#allocation8 + $0x50] sm:$0xff]  ;;  %v409_v12 = vld [vmem:[#allocation8 + $0xc8] sm:$0xff] }
  0x4c   :  { %705 = vmatpush3.msra.mxu0 %v185_v33  ;;  %250 = vmatprep.subr.mxu1 %v181_v34  ;;  %v425_v13 = vld [vmem:[#allocation8 + $0x148] sm:$0xff]  ;;  %v408_v15 = vld [vmem:[#allocation8 + $0xc0] sm:$0xff]  ;;  %v407_v18 = vld [vmem:[#allocation8 + $0xb8] sm:$0xff] }
  0x4d   :  { %706 = vmatprep.subr.mxu0 %v887_v0  ;;  %251 = vmatpush1.msra.mxu1 %v180_v35  ;;  %v393_v14 = vld [vmem:[#allocation8 + $0x48] sm:$0xff]  ;;  %v424_v16 = vld [vmem:[#allocation8 + $0x140] sm:$0xff]  ;;  %v423_v19 = vld [vmem:[#allocation8 + $0x138] sm:$0xff] }
  0x4e   :  { %707 = vmatpush3.msra.mxu0 %v182_v36  ;;  %252 = vmatprep.subr.mxu1 %v178_v37  ;;  %v392_v17 = vld [vmem:[#allocation8 + $0x40] sm:$0xff]  ;;  %v391_v20 = vld [vmem:[#allocation8 + $0x38] sm:$0xff]  ;;  %v406_v21 = vld [vmem:[#allocation8 + $0xb0] sm:$0xff] }
  0x4f   :  { %708 = vmatprep.subr.mxu0 %v887_v0  ;;  %253 = vmatpush1.msra.mxu1 %v177_v38  ;;  %v422_v22 = vld [vmem:[#allocation8 + $0x130] sm:$0xff]  ;;  %v405_v24 = vld [vmem:[#allocation8 + $0xa8] sm:$0xff]  ;;  %v404_v27 = vld [vmem:[#allocation8 + $0xa0] sm:$0xff] }
  0x50   :  { %709 = vmatpush3.msra.mxu0 %v179_v39  ;;  %254 = vmatprep.subr.mxu1 %v175_v40  ;;  %v390_v23 = vld [vmem:[#allocation8 + $0x30] sm:$0xff]  ;;  %v421_v25 = vld [vmem:[#allocation8 + $0x128] sm:$0xff]  ;;  %v420_v28 = vld [vmem:[#allocation8 + $0x120] sm:$0xff] }
  0x51   :  { %710 = vmatprep.subr.mxu0 %v887_v0  ;;  %255 = vmatpush1.msra.mxu1 %v174_v41  ;;  %v389_v26 = vld [vmem:[#allocation8 + $0x28] sm:$0xff]  ;;  %v388_v29 = vld [vmem:[#allocation8 + $0x20] sm:$0xff]  ;;  %v419_v30 = vld [vmem:[#allocation8 + $0x118] sm:$0xff] }
  0x52   :  { %711 = vmatpush3.msra.mxu0 %v176_v42  ;;  %256 = vmatprep.subr.mxu1 %v172_v43  ;;  %v403_v31 = vld [vmem:[#allocation8 + $0x98] sm:$0xff]  ;;  %v418_v32 = vld [vmem:[#allocation8 + $0x110] sm:$0xff]  ;;  %v417_v35 = vld [vmem:[#allocation8 + $0x108] sm:$0xff]  ;;  %v215_v42 = vlaneseq }
  0x53   :  { %712 = vmatprep.subr.mxu0 %v887_v0  ;;  %718 = vmatprep.mubr.msk.f32.mxu0 %vm888_vm0, %v887_v0  ;;  %v387_v33 = vld [vmem:[#allocation8 + $0x18] sm:$0xff]  ;;  %v402_v34 = vld [vmem:[#allocation8 + $0x90] sm:$0xff]  ;;  %v401_v37 = vld [vmem:[#allocation8 + $0x88] sm:$0xff] }
  0x54   :  { %257 = vmatpush1.msra.mxu1 %v171_v44  ;;  %713 = vmatpush3.msra.mxu0 %v173_v45  ;;  %v386_v36 = vld [vmem:[#allocation8 + $0x10] sm:$0xff]  ;;  %v416_v38 = vld [vmem:[#allocation8 + $0x100] sm:$0xff]  ;;  %v385_v39 = vld [vmem:[#allocation8 + $0x8] sm:$0xff]  ;;  %v216_v43 = vshrl.u32 %v215_v42, 7 }
  0x55   :  { %258 = vmatprep.subr.mxu1 %v169_v46  ;;  %714 = vmatprep.subr.mxu0 %v887_v0  ;;  %v400_v40 = vld [vmem:[#allocation8 + $0x80] sm:$0xff]  ;;  %v213_v45 = vld [vmem:[%s1005_s4] sm:$0x7] }
  0x56   :  { %259 = vmatpush1.msra.mxu1 %v168_v47  ;;  %715 = vmatpush3.msra.mxu0 %v170_v48  ;;  %v384_v41 = vld [vmem:[#allocation8] sm:$0xff]  ;;  %v225_v44 = vsub.s32 2, %v216_v43  ;;  %v221_v46 = vsub.s32 1, %v216_v43 }
  0x57   :  { %260 = vmatprep.subr.mxu1 %v166_v49  ;;  %716 = vmatprep.subr.mxu0 %v887_v0 }
  0x58   :  { %261 = vmatpush1.msra.mxu1 %v165_v50  ;;  %717 = vmatpush3.msra.mxu0 %v167_v51  ;;  %v226_v47 = vrot.slane %v213_v45, %v225_v44  ;;  %v222_v48 = vrot.slane %v213_v45, %v221_v46 }
  0x59   :  { %721 = vmatprep.subr.mxu0 %v887_v0  ;;  %627 = vmatprep.subr.mxu1 %v415_v52 }
  0xf9   :  { %v160_v54 = vpop.f32.mrf.mxu0 }
  0xfa   :  { %v161_v55 = vadd.f32 %v603_v53, %v160_v54 }
  0xfb   :  { %v685_v56 = vpop.f32.mrf.mxu0 }
  0xfc   :  { %v164_v57 = vmax.f32 %v161_v55, 0.0 }
  0xfe   :  { %295 = vmatmul.mubr.f32.vlgmr.msra.gmra.mxu1 %v164_v57  ;;  %719 = vmatmul.mubr.f32.vlgmr.msra.gmra.mxu0 %v164_v57 }
  0xff   :  { %722 = vmatpush3.msra.mxu0 %v431_v58  ;;  %628 = vmatpush3.msra.mxu1 %v399_v59 }
 0x100   :  { %723 = vmatprep.subr.mxu0 %v887_v0  ;;  %629 = vmatprep.subr.mxu1 %v414_v60 }
 0x101   :  { %724 = vmatpush3.msra.mxu0 %v430_v61  ;;  %630 = vmatpush3.msra.mxu1 %v398_v62  ;;  %v605_v62 = vld [vmem:[%s1007_s6] ss:$0 sm:$0xff] }
 0x102   :  { %725 = vmatprep.subr.mxu0 %v887_v0  ;;  %631 = vmatprep.subr.mxu1 %v413_v63 }
 0x103   :  { %726 = vmatpush3.msra.mxu0 %v429_v1  ;;  %632 = vmatpush3.msra.mxu1 %v397_v2 }
 0x104   :  { %727 = vmatprep.subr.mxu0 %v887_v0  ;;  %633 = vmatprep.subr.mxu1 %v412_v3 }
 0x105   :  { %728 = vmatpush3.msra.mxu0 %v428_v4  ;;  %634 = vmatpush3.msra.mxu1 %v396_v5 }
 0x106   :  { %729 = vmatprep.subr.mxu0 %v887_v0  ;;  %635 = vmatprep.subr.mxu1 %v411_v6 }
 0x107   :  { %730 = vmatpush3.msra.mxu0 %v427_v7  ;;  %636 = vmatpush3.msra.mxu1 %v395_v8 }
 0x108   :  { %731 = vmatprep.subr.mxu0 %v887_v0  ;;  %637 = vmatprep.subr.mxu1 %v410_v9 }
 0x109   :  { %732 = vmatpush3.msra.mxu0 %v426_v10  ;;  %638 = vmatpush3.msra.mxu1 %v394_v11 }
 0x10a   :  { %733 = vmatprep.subr.mxu0 %v887_v0  ;;  %639 = vmatprep.subr.mxu1 %v409_v12 }
 0x10b   :  { %734 = vmatpush3.msra.mxu0 %v425_v13  ;;  %640 = vmatpush3.msra.mxu1 %v393_v14 }
 0x10c   :  { %735 = vmatprep.subr.mxu0 %v887_v0  ;;  %641 = vmatprep.subr.mxu1 %v408_v15 }
 0x10d   :  { %736 = vmatpush3.msra.mxu0 %v424_v16  ;;  %642 = vmatpush3.msra.mxu1 %v392_v17 }
 0x10e   :  { %737 = vmatprep.subr.mxu0 %v887_v0  ;;  %643 = vmatprep.subr.mxu1 %v407_v18 }
 0x10f   :  { %738 = vmatpush3.msra.mxu0 %v423_v19  ;;  %644 = vmatpush3.msra.mxu1 %v391_v20 }
 0x110   :  { %739 = vmatprep.subr.mxu0 %v887_v0  ;;  %645 = vmatprep.subr.mxu1 %v406_v21 }
 0x111   :  { %740 = vmatpush3.msra.mxu0 %v422_v22  ;;  %646 = vmatpush3.msra.mxu1 %v390_v23 }
 0x112   :  { %741 = vmatprep.subr.mxu0 %v887_v0  ;;  %647 = vmatprep.subr.mxu1 %v405_v24 }
 0x113   :  { %742 = vmatpush3.msra.mxu0 %v421_v25  ;;  %648 = vmatpush3.msra.mxu1 %v389_v26 }
 0x114   :  { %743 = vmatprep.subr.mxu0 %v887_v0  ;;  %649 = vmatprep.subr.mxu1 %v404_v27 }
 0x115   :  { %744 = vmatpush3.msra.mxu0 %v420_v28  ;;  %650 = vmatpush3.msra.mxu1 %v388_v29 }
 0x116   :  { %745 = vmatprep.subr.mxu0 %v887_v0  ;;  %753 = vmatprep.mubr.msk.f32.mxu0 %vm888_vm0, %v887_v0 }
 0x117   :  { %746 = vmatpush3.msra.mxu0 %v419_v30  ;;  %651 = vmatprep.subr.mxu1 %v403_v31 }
 0x118   :  { %747 = vmatprep.subr.mxu0 %v887_v0  ;;  %652 = vmatpush3.msra.mxu1 %v387_v33 }
 0x119   :  { %748 = vmatpush3.msra.mxu0 %v418_v32  ;;  %653 = vmatprep.subr.mxu1 %v402_v34 }
 0x11a   :  { %749 = vmatprep.subr.mxu0 %v887_v0  ;;  %654 = vmatpush3.msra.mxu1 %v386_v36 }
 0x11b   :  { %750 = vmatpush3.msra.mxu0 %v417_v35  ;;  %655 = vmatprep.subr.mxu1 %v401_v37 }
 0x11c   :  { %751 = vmatprep.subr.mxu0 %v887_v0  ;;  %656 = vmatpush3.msra.mxu1 %v385_v39  ;;  %v217_v0 = vsub.s32 0, %v216_v43 }
 0x11d   :  { %752 = vmatpush3.msra.mxu0 %v416_v38  ;;  %657 = vmatprep.subr.mxu1 %v400_v40 }
 0x11e   :  { %658 = vmatpush3.msra.mxu1 %v384_v41  ;;  %v218_v52 = vrot.slane %v213_v45, %v217_v0 }
 0x1be   :  { %v296_v49 = vpop.f32.mrf.mxu1  ;;  %v367_v50 = vpop.f32.mrf.mxu0 }
 0x1bf   :  { %v368_v51 = vadd.f32 %v367_v50, %v226_v47  ;;  %v297_v58 = vadd.f32 %v296_v49, %v218_v52 }
 0x1c0   :  { %v298_v53 = vpop.f32.mrf.mxu1  ;;  %v720_v54 = vpop.f32.mrf.mxu0 }
 0x1c1   :  { %v380_v55 = vmax.f32 %v368_v51, 0.0  ;;  %v299_v56 = vadd.f32 %v298_v53, %v222_v48 }
 0x1c3   :  { %v379_v57 = vmax.f32 %v299_v56, 0.0  ;;  %754 = vmatmul.mubr.f32.vlgmr.msra.gmra.mxu0 %v380_v55 }
 0x1c5   :  { %503 = vmatprep.mubr.f32.mxu1 %v379_v57 }
 0x1c6   :  { %504 = vmatmul.mubr.f32.vlgmr.msra.gmra.mxu1 %v297_v58 }
 0x283   :  { %v575_v59 = vpop.f32.mrf.mxu0 }
 0x285   :  { %v755_v60 = vpop.f32.mrf.mxu0 }
 0x286   :  { %v659_v61 = vpop.f32.mrf.mxu1 }
 0x288   :  { %v660_v63 = vpop.f32.mrf.mxu1 }
 0x289   :  { %v661_v1 = vadd.f32 %v660_v63, %v659_v61 }
 0x28b   :  { %v506_v2 = vadd.f32 %v661_v1, %v605_v62 }
 0x28d   :  { %v576_v3 = vadd.f32 %v575_v59, %v506_v2 }
 0x28f   :  { %v606_v4 = vmul.f32 -1.442695, %v576_v3 }
 0x291   :  { %767 = vpow2.f32 %v606_v4 }
 0x29e   :  { %v768_v5 = vpop.eup %767 }
 0x29f   :  { %v582_v6 = vadd.f32 1.0, %v768_v5 }
 0x2a1   :  { %769 = vrcp.f32 %v582_v6 }
 0x2ae   :  { %v770_v7 = vpop.eup %769 }
 0x2af   :  { %585 = vst [vmem:[#allocation10] sm:$0xff] %v770_v7 }
 0x2b0   :  { %862 = shalt.err (!%p859_p10)
}
 0x2b1   :  { %595 = dma.vmem_to_hbm [thread:$0]  %s593_s26, 128, %s1008_s7, [#allocation4]  }
 0x2b2   :  { %877 = dma.done.wait [#allocation4], 128  }
 0x2b3   :  { %878 = vsyncadd [#allocation4], 4294967168 }
 0x2b4   :  { %599 = vsyncpa [#allocation3], 1 }
 0x2b5   :  { %600 = vsyncpa [#allocation6], 1 }
 0x2b6   :  { %601 = vsyncpa [#allocation9], 1 }
 0x2b7   :  { %602 = vsyncpa [#allocation4], 1 }

</bundles_post_ra>
